<compile_context>
chip_gen: v7x
topology: tpu7x:2x2x1
jax: 0.10.0
libtpu: 0.0.40
codegen_flags: <defaults>
</compile_context>

<pallas_src>
import functools

import jax
import jax.numpy as jnp
from jax import lax
from jax.experimental import pallas as pl
from jax.experimental.pallas import tpu as pltpu


# ----------------------------------------------------------------------------
# Pallas kernel 1: fused 3-layer pointwise MLP (the Conv1d(1x1) encoder hot path)
# ----------------------------------------------------------------------------
def _mlp3_kernel(x_ref, w1_ref, b1_ref, w2_ref, b2_ref, w3_ref, b3_ref, o_ref):
    # x / w* are bf16, biases f32; accumulate every matmul in f32 on the MXU.
    h = jnp.dot(x_ref[...], w1_ref[...], preferred_element_type=jnp.float32) + b1_ref[...]
    h = jnp.maximum(h, 0.0).astype(jnp.bfloat16)
    h = jnp.dot(h, w2_ref[...], preferred_element_type=jnp.float32) + b2_ref[...]
    h = jnp.maximum(h, 0.0).astype(jnp.bfloat16)
    o_ref[...] = jnp.dot(h, w3_ref[...], preferred_element_type=jnp.float32) + b3_ref[...]


def pointwise_mlp(x, w1, b1, w2, b2, w3, b3):
    """x: (R, Cin) f32 -> (R, Cout) f32. Fused [Linear+ReLU, Linear+ReLU, Linear]."""
    R, Cin = x.shape
    H = w1.shape[1]
    Cout = w3.shape[1]

    # lane-dense output slab
    Cout_p = 128 * ((Cout + 127) // 128)
    if Cout_p != Cout:
        w3 = jnp.pad(w3, ((0, 0), (0, Cout_p - Cout)))
        b3 = jnp.pad(b3, ((0, 0), (0, Cout_p - Cout)))

    # Largest-tile row tiling: one tile below 1024 rows (per-step overhead dominates),
    # 512-row tiles above (pipelined, VMEM-bounded, balanced work for v7x's 2 TCs).
    if R >= 1024:
        TR = 512
    else:
        TR = ((R + 15) // 16) * 16
    R_p = ((R + TR - 1) // TR) * TR
    xp = x if R_p == R else jnp.pad(x, ((0, R_p - R), (0, 0)))

    def rep(shape):
        return pl.BlockSpec(shape, lambda i: (0,) * len(shape))

    out = pl.pallas_call(
        _mlp3_kernel,
        out_shape=jax.ShapeDtypeStruct((R_p, Cout_p), jnp.float32),
        grid=(R_p // TR,),
        in_specs=[
            pl.BlockSpec((TR, Cin), lambda i: (i, 0)),
            rep((Cin, H)), rep((1, H)),
            rep((H, H)), rep((1, H)),
            rep((H, Cout_p)), rep((1, Cout_p)),
        ],
        out_specs=pl.BlockSpec((TR, Cout_p), lambda i: (i, 0)),
        compiler_params=pltpu.CompilerParams(dimension_semantics=("parallel",)),
    )(xp.astype(jnp.bfloat16),
      w1.astype(jnp.bfloat16), b1,
      w2.astype(jnp.bfloat16), b2,
      w3.astype(jnp.bfloat16), b3)
    return out[:R, :Cout]


# ----------------------------------------------------------------------------
# Pallas kernel 2: per-batch overlap head.
# Layer-1 contributions of the broadcast global features are folded into a
# per-batch bias (computed in plain JAX), so the (rows, 3*Fd) concat never
# exists in HBM. src and tgt rows of a batch are fused into one MXU pass.
# ----------------------------------------------------------------------------
def _ol_head_kernel(fsrc_ref, ftgt_ref, bsrc_ref, btgt_ref,
                    w1_ref, w2_ref, b2_ref, w3_ref, b3_ref,
                    xout_ref, yout_ref, *, n, m):
    rows = jnp.concatenate([fsrc_ref[0], ftgt_ref[0]], axis=0)          # (n+m, Fd) bf16
    h = jnp.dot(rows, w1_ref[...], preferred_element_type=jnp.float32)  # (n+m, H)
    hd = h.shape[1]
    bias = jnp.concatenate([jnp.broadcast_to(bsrc_ref[0], (n, hd)),
                            jnp.broadcast_to(btgt_ref[0], (m, hd))], axis=0)
    h = jnp.maximum(h + bias, 0.0).astype(jnp.bfloat16)
    h = jnp.dot(h, w2_ref[...], preferred_element_type=jnp.float32) + b2_ref[...]
    h = jnp.maximum(h, 0.0).astype(jnp.bfloat16)
    out = jnp.dot(h, w3_ref[...], preferred_element_type=jnp.float32) + b3_ref[...]
    xout_ref[0] = out[:n]
    yout_ref[0] = out[n:]


def overlap_head(feat_src, feat_tgt, bias_src, bias_tgt, w1a, w2, b2, w3, b3):
    B, N, Fd = feat_src.shape
    M = feat_tgt.shape[1]
    H = w1a.shape[1]
    Cout = w3.shape[1]
    Cout_p = 128 * ((Cout + 127) // 128)
    if Cout_p != Cout:
        w3 = jnp.pad(w3, ((0, 0), (0, Cout_p - Cout)))
        b3 = jnp.pad(b3, ((0, 0), (0, Cout_p - Cout)))

    def rep(shape):
        return pl.BlockSpec(shape, lambda b: (0,) * len(shape))

    kernel = functools.partial(_ol_head_kernel, n=N, m=M)
    x_out, y_out = pl.pallas_call(
        kernel,
        out_shape=(jax.ShapeDtypeStruct((B, N, Cout_p), jnp.float32),
                   jax.ShapeDtypeStruct((B, M, Cout_p), jnp.float32)),
        grid=(B,),
        in_specs=[
            pl.BlockSpec((1, N, Fd), lambda b: (b, 0, 0)),
            pl.BlockSpec((1, M, Fd), lambda b: (b, 0, 0)),
            pl.BlockSpec((1, 1, H), lambda b: (b, 0, 0)),
            pl.BlockSpec((1, 1, H), lambda b: (b, 0, 0)),
            rep((Fd, H)), rep((H, H)), rep((1, H)),
            rep((H, Cout_p)), rep((1, Cout_p)),
        ],
        out_specs=(pl.BlockSpec((1, N, Cout_p), lambda b: (b, 0, 0)),
                   pl.BlockSpec((1, M, Cout_p), lambda b: (b, 0, 0))),
        compiler_params=pltpu.CompilerParams(dimension_semantics=("parallel",)),
    )(feat_src.astype(jnp.bfloat16), feat_tgt.astype(jnp.bfloat16),
      bias_src, bias_tgt,
      w1a.astype(jnp.bfloat16), w2.astype(jnp.bfloat16), b2,
      w3.astype(jnp.bfloat16), b3)
    return x_out[:, :, :Cout], y_out[:, :, :Cout]


# ----------------------------------------------------------------------------
# Pallas kernel 3: fused fine stage, per batch:
#   feature MLP (src+tgt fused rows) -> similarity -> softmax -> soft corr + row-max.
# Output is a lane-dense (N1, 128) slab: cols 0..2 = corr xyz, col 3 = max prob.
# ----------------------------------------------------------------------------
def _fine_kernel(src_ref, tgt_ref, w1_ref, b1_ref, w2_ref, b2_ref, w3_ref, b3_ref,
                 out_ref, *, n1, m, scale):
    src = src_ref[0]                                   # (n1, 3) f32
    tgt = tgt_ref[0]                                   # (m, 3)  f32
    pts = jnp.concatenate([src, tgt], axis=0).astype(jnp.bfloat16)   # one MXU pass/layer
    h = jnp.dot(pts, w1_ref[...], preferred_element_type=jnp.float32) + b1_ref[...]
    h = jnp.maximum(h, 0.0).astype(jnp.bfloat16)
    h = jnp.dot(h, w2_ref[...], preferred_element_type=jnp.float32) + b2_ref[...]
    h = jnp.maximum(h, 0.0).astype(jnp.bfloat16)
    feat = jnp.dot(h, w3_ref[...], preferred_element_type=jnp.float32) + b3_ref[...]
    sf = feat[:n1].astype(jnp.bfloat16)
    tf = feat[n1:].astype(jnp.bfloat16)

    s = lax.dot_general(sf, tf, (((1,), (1,)), ((), ())),
                        preferred_element_type=jnp.float32) * scale   # (n1, m)
    s = s - jnp.max(s, axis=-1, keepdims=True)
    e = jnp.exp(s)
    p = e / jnp.sum(e, axis=-1, keepdims=True)         # exact softmax (parity w/ ref)
    maxp = jnp.max(p, axis=-1, keepdims=True)          # (n1, 1)

    # Build a (3, 128) xyz selector in VMEM (iota-based; no HBM pad / lane concat).
    r = lax.broadcasted_iota(jnp.int32, (3, 128), 0)
    c = lax.broadcasted_iota(jnp.int32, (3, 128), 1)
    sel = (r == c).astype(jnp.float32)
    corr3 = jnp.dot(p, tgt, preferred_element_type=jnp.float32)       # (n1, 3) f32
    corr = jnp.dot(corr3, sel, preferred_element_type=jnp.float32)    # (n1, 128), cols>=3 zero

    lane = lax.broadcasted_iota(jnp.int32, (n1, 128), 1)
    out_ref[0] = jnp.where(lane == 3, maxp, corr)      # pack max prob into lane 3


def fine_fused(feat_params, src_sel, tgt):
    """src_sel: (B, N1, 3), tgt: (B, M, 3) -> corr (B, N1, 3), max_probs (B, N1)."""
    B, N1, _ = src_sel.shape
    M = tgt.shape[1]
    w1, b1, w2, b2, w3, b3 = feat_params
    F = w3.shape[1]
    H = w1.shape[1]

    # TODO(synk): for large M the (N1, M) probs block should be tiled over M with an
    #             online-softmax accumulator (v7x 64 MiB VMEM); at these sizes one
    #             per-batch block fits comfortably on all generations.
    def rep(shape):
        return pl.BlockSpec(shape, lambda b: (0,) * len(shape))

    kernel = functools.partial(_fine_kernel, n1=N1, m=M, scale=1.0 / float(F) ** 0.5)
    slab = pl.pallas_call(
        kernel,
        out_shape=jax.ShapeDtypeStruct((B, N1, 128), jnp.float32),
        grid=(B,),
        in_specs=[
            pl.BlockSpec((1, N1, 3), lambda b: (b, 0, 0)),
            pl.BlockSpec((1, M, 3), lambda b: (b, 0, 0)),
            rep((3, H)), rep((1, H)),
            rep((H, H)), rep((1, H)),
            rep((H, F)), rep((1, F)),
        ],
        out_specs=pl.BlockSpec((1, N1, 128), lambda b: (b, 0, 0)),
        compiler_params=pltpu.CompilerParams(dimension_semantics=("parallel",)),
    )(src_sel, tgt,
      w1.astype(jnp.bfloat16), b1,
      w2.astype(jnp.bfloat16), b2,
      w3.astype(jnp.bfloat16), b3)

    corr = slab[:, :, :3]
    max_probs = slab[:, :, 3]
    return corr, max_probs


# ----------------------------------------------------------------------------
# Plain-JAX glue (tiny 3x3 transforms, gathers, SVD, quaternion, pose head)
# ----------------------------------------------------------------------------
def mlp3_jax(x, w1, b1, w2, b2, w3, b3):
    h = jax.nn.relu(x @ w1 + b1)
    h = jax.nn.relu(h @ w2 + b2)
    return h @ w3 + b3


def batch_transform(x, R, t=None):
    """x: (B, N, 3), R: (B, 3, 3), t: (B, 3) or None.  3x3 matmul: plain JAX."""
    y = jnp.einsum('bnj,bij->bni', x, R)
    if t is not None:
        y = y + t[:, None, :]
    return y


def gather_points(points, inds):
    # points: (B, N, C), inds: (B, K) -> (B, K, C)
    return jnp.take_along_axis(points, inds[..., None], axis=1)


def quat_to_rotmat(q):
    q = q / jnp.linalg.norm(q, axis=-1, keepdims=True)
    w, x, y, z = q[..., 0], q[..., 1], q[..., 2], q[..., 3]
    R = jnp.stack([
        1 - 2 * (y * y + z * z), 2 * (x * y - w * z), 2 * (x * z + w * y),
        2 * (x * y + w * z), 1 - 2 * (x * x + z * z), 2 * (y * z - w * x),
        2 * (x * z - w * y), 2 * (y * z + w * x), 1 - 2 * (x * x + y * y)],
        axis=-1)
    return R.reshape(q.shape[:-1] + (3, 3))


def weighted_icp(src, tgt, weights):
    """Weighted Kabsch: find R,t minimizing sum_i w_i ||R src_i + t - tgt_i||^2."""
    w = weights / (jnp.sum(weights, axis=1, keepdims=True) + 1e-8)
    cs = jnp.sum(w[..., None] * src, axis=1)
    ct = jnp.sum(w[..., None] * tgt, axis=1)
    src_c = src - cs[:, None, :]
    tgt_c = tgt - ct[:, None, :]
    H = jnp.einsum('bni,bn,bnj->bij', src_c, w, tgt_c)
    # TODO(synk): SVD has no Pallas equivalent; Kabsch solve stays in plain JAX.
    U, _, Vt = jnp.linalg.svd(H)
    V = jnp.swapaxes(Vt, -1, -2)
    Ut = jnp.swapaxes(U, -1, -2)
    det = jnp.linalg.det(V @ Ut)
    D = jnp.stack([jnp.ones_like(det), jnp.ones_like(det), det], axis=-1)
    R = (V * D[:, None, :]) @ Ut
    t = ct - jnp.einsum('bij,bj->bi', R, cs)
    return R, t


# ----------------------------------------------------------------------------
# Coarse2 and Fine sub-modules (synthetic weights, Pallas hot paths)
# ----------------------------------------------------------------------------
def coarse2(params, src, tgt):
    B, N, _ = src.shape
    M = tgt.shape[1]
    p = params['coarse']
    # TODO(synk): GroupNorm (gn=True) layers of the original Coarse2 are omitted.

    Fd = p['enc'][4].shape[1]

    # one fused launch for the shared point encoder over src AND tgt rows
    pts_all = jnp.concatenate([src.reshape(B * N, 3), tgt.reshape(B * M, 3)], axis=0)
    feat_all = pointwise_mlp(pts_all, *p['enc'])                 # (B*(N+M), Fd)
    feat_src = feat_all[:B * N].reshape(B, N, Fd)
    feat_tgt = feat_all[B * N:].reshape(B, M, Fd)

    g_src = jnp.max(feat_src, axis=1)                            # (B, Fd)
    g_tgt = jnp.max(feat_tgt, axis=1)

    # pose head (B rows): plain JAX — a dedicated pallas_call is pure launch overhead.
    pose = mlp3_jax(jnp.concatenate([g_src, g_tgt], axis=-1), *p['pose'])
    quat = pose[:, :4] + jnp.array([1.0, 0.0, 0.0, 0.0], jnp.float32)
    R = quat_to_rotmat(quat)
    t = pose[:, 4:7]
    T0 = jnp.concatenate([R, t[:, :, None]], axis=-1)

    # per-point overlap logits: broadcast global-feature terms of layer 1 collapse
    # into per-batch biases, so no (rows, 3*Fd) concat is ever materialized in HBM.
    w1, b1, w2, b2, w3, b3 = p['ol']
    w1a, w1b, w1c = w1[:Fd], w1[Fd:2 * Fd], w1[2 * Fd:]
    bias_src = (g_src @ w1b + g_tgt @ w1c + b1)[:, None, :]      # (B, 1, H)
    bias_tgt = (g_tgt @ w1b + g_src @ w1c + b1)[:, None, :]
    x_ol, y_ol = overlap_head(feat_src, feat_tgt, bias_src, bias_tgt,
                              w1a, w2, b2, w3, b3)               # (B, N, 2), (B, M, 2)
    # PyTorch NCW convention -> (B, 2, N)
    return T0, jnp.transpose(x_ol, (0, 2, 1)), jnp.transpose(y_ol, (0, 2, 1))


def fine(params, src, tgt, x_ol_score, y_ol_score, N1, N2):
    # TODO(synk): Fine submodule source not given; y_ol_score is not used in this
    #             synthetic version (original may pre-filter tgt by overlap score).
    x_inds = jnp.argsort(-x_ol_score, axis=-1)[:, :N1]                 # (B, N1)
    src_sel = gather_points(src, x_inds)                               # (B, N1, 3)
    # fused per-batch Pallas kernel: features + similarity + softmax + corr + row-max
    corr, max_probs = fine_fused(params['fine']['feat'], src_sel, tgt)
    similarity_max_inds = jnp.argsort(-max_probs, axis=-1)[:, :N2]     # into [0, N1)
    src_out = gather_points(src_sel, similarity_max_inds)
    tgt_corr = gather_points(corr, similarity_max_inds)
    icp_weights = jnp.take_along_axis(max_probs, similarity_max_inds, axis=1)
    return src_out, tgt_corr, icp_weights, similarity_max_inds


# ----------------------------------------------------------------------------
# ROPNet2 forward
# ----------------------------------------------------------------------------
def ropnet2_forward(params, src, tgt, num_iter=1, N1=32, N2=16):
    src = src[..., :3].astype(jnp.float32)
    tgt = tgt[..., :3].astype(jnp.float32)
    src_raw = src
    results = {}
    pred_Ts, pred_src, pred_src_R = [], [], []

    T0, x_ol, y_ol = coarse2(params, src, tgt)
    R, t = T0[:, :3, :3], T0[:, :3, 3]
    src_t_R = batch_transform(src_raw, R)            # rotate once,
    src_t = src_t_R + t[:, None, :]                  # derive the translated version
    pred_Ts.append(T0)
    pred_src.append(src_t)
    pred_src_R.append(src_t_R)

    x_ol_score = jax.nn.softmax(x_ol, axis=1)[:, 1, :]
    y_ol_score = jax.nn.softmax(y_ol, axis=1)[:, 1, :]

    similarity_max_inds = None
    for _ in range(num_iter):
        src_sel, tgt_corr, icp_weights, similarity_max_inds = fine(
            params, src_t, tgt, x_ol_score, y_ol_score, N1, N2)
        R_cur, t_cur = weighted_icp(src_sel, tgt_corr, icp_weights)
        R = R_cur @ R
        t = (R_cur @ t[:, :, None] + t_cur[:, :, None])[..., 0]
        T = jnp.concatenate([R, t[:, :, None]], axis=-1)
        pred_Ts.append(T)
        src_t_R = batch_transform(src_raw, R)
        src_t = src_t_R + t[:, None, :]
        pred_src.append(src_t)
        pred_src_R.append(src_t_R)

    x_ol_inds = jnp.argsort(-x_ol_score, axis=-1)[:, :N1]
    src_ol1 = gather_points(src_raw, x_ol_inds)
    src_ol2 = gather_points(src_ol1, similarity_max_inds)

    results['pred_Ts'] = pred_Ts
    results['pred_src'] = pred_src
    results['pred_src_R'] = pred_src_R
    results['x_ol'] = x_ol
    results['y_ol'] = y_ol
    results['src_ol1'] = src_ol1
    results['src_ol2'] = src_ol2
    return results


# ----------------------------------------------------------------------------
# Deterministic parameter init (lane-dense widths: hidden = feat = 128)
# ----------------------------------------------------------------------------
def init_mlp(key, cin, hidden, cout, scale=0.2):
    ks = jax.random.split(key, 6)
    w1 = jax.random.normal(ks[0], (cin, hidden), jnp.float32) * scale / (cin ** 0.5)
    b1 = jax.random.normal(ks[1], (1, hidden), jnp.float32) * 0.01
    w2 = jax.random.normal(ks[2], (hidden, hidden), jnp.float32) * scale / (hidden ** 0.5)
    b2 = jax.random.normal(ks[3], (1, hidden), jnp.float32) * 0.01
    w3 = jax.random.normal(ks[4], (hidden, cout), jnp.float32) * scale / (hidden ** 0.5)
    b3 = jax.random.normal(ks[5], (1, cout), jnp.float32) * 0.01
    return (w1, b1, w2, b2, w3, b3)


def init_params(key, hidden=128, feat=128):
    k0, k1, k2, k3 = jax.random.split(key, 4)
    return {
        'coarse': {
            'enc': init_mlp(k0, 3, hidden, feat),
            'pose': init_mlp(k1, 2 * feat, hidden, 7),
            'ol': init_mlp(k2, 3 * feat, hidden, 2),
        },
        'fine': {
            'feat': init_mlp(k3, 3, hidden, feat),
        },
    }


if __name__ == "__main__":
    key = jax.random.PRNGKey(0)
    k_src, k_tgt, k_par = jax.random.split(key, 3)
    B, N, M = 2, 64, 64
    N1, N2 = 32, 16   # args.test_N1 analogue
    src = jax.random.normal(k_src, (B, N, 3), jnp.float32)
    tgt = jax.random.normal(k_tgt, (B, M, 3), jnp.float32)
    params = init_params(k_par)

    results = ropnet2_forward(params, src, tgt, num_iter=1, N1=N1, N2=N2)

    jax.block_until_ready(results['pred_Ts'][-1])
    jax.block_until_ready(results['pred_src'][-1])
    jax.block_until_ready(results['src_ol2'])

    assert results['pred_Ts'][0].shape == (B, 3, 4)
    assert results['pred_Ts'][-1].shape == (B, 3, 4)
    assert results['pred_src'][-1].shape == (B, N, 3)
    assert results['x_ol'].shape == (B, 2, N)
    assert results['y_ol'].shape == (B, 2, M)
    assert results['src_ol1'].shape == (B, N1, 3)
    assert results['src_ol2'].shape == (B, N2, 3)
    assert bool(jnp.all(jnp.isfinite(results['pred_Ts'][-1])))
    assert bool(jnp.all(jnp.isfinite(results['pred_src'][-1])))

    print("KERNEL_OK")
</pallas_src>

<mosaic_0001>
module attributes {stable_mosaic.version = 11 : i64} {
  func.func @_mlp3_kernel(%arg0: i32, %arg1: memref<256x3xbf16, #tpu.memory_space<vmem>>, %arg2: memref<3x128xbf16, #tpu.memory_space<vmem>>, %arg3: memref<1x128xf32, #tpu.memory_space<vmem>>, %arg4: memref<128x128xbf16, #tpu.memory_space<vmem>>, %arg5: memref<1x128xf32, #tpu.memory_space<vmem>>, %arg6: memref<128x128xbf16, #tpu.memory_space<vmem>>, %arg7: memref<1x128xf32, #tpu.memory_space<vmem>>, %arg8: memref<256x128xf32, #tpu.memory_space<vmem>>) attributes {dimension_semantics = [#tpu.dimension_semantics<parallel>], iteration_bounds = array<i64: 1>, scalar_prefetch = 0 : i64, scratch_operands = 0 : i64, tpu.core_type = #tpu.core_type<tc>, window_params = [{transform_indices = @transform_0, window_bounds = array<i64: 256, 3>}, {pipeline_mode = #tpu.pipeline_mode<synchronous>, transform_indices = @transform_1, window_bounds = array<i64: 3, 128>}, {pipeline_mode = #tpu.pipeline_mode<synchronous>, transform_indices = @transform_2, window_bounds = array<i64: 1, 128>}, {pipeline_mode = #tpu.pipeline_mode<synchronous>, transform_indices = @transform_3, window_bounds = array<i64: 128, 128>}, {pipeline_mode = #tpu.pipeline_mode<synchronous>, transform_indices = @transform_4, window_bounds = array<i64: 1, 128>}, {pipeline_mode = #tpu.pipeline_mode<synchronous>, transform_indices = @transform_5, window_bounds = array<i64: 128, 128>}, {pipeline_mode = #tpu.pipeline_mode<synchronous>, transform_indices = @transform_6, window_bounds = array<i64: 1, 128>}, {transform_indices = @transform_7, window_bounds = array<i64: 256, 128>}]} {
    %c0 = arith.constant 0 : index
    %c0_0 = arith.constant 0 : index
    %0 = vector.load %arg1[%c0, %c0_0] : memref<256x3xbf16, #tpu.memory_space<vmem>>, vector<256x3xbf16>
    %c0_1 = arith.constant 0 : index
    %c0_2 = arith.constant 0 : index
    %1 = vector.load %arg2[%c0_1, %c0_2] : memref<3x128xbf16, #tpu.memory_space<vmem>>, vector<3x128xbf16>
    %cst = arith.constant dense<0.000000e+00> : vector<256x128xf32>
    %2 = tpu.matmul %0, %1, %cst {dimension_numbers = #tpu.dot_dimension_numbers<[1], [0], [0], [1], [0, 0, 1, 1], [], []>} : vector<256x3xbf16>, vector<3x128xbf16>, vector<256x128xf32> -> vector<256x128xf32>
    %c0_3 = arith.constant 0 : index
    %c0_4 = arith.constant 0 : index
    %3 = vector.load %arg3[%c0_3, %c0_4] : memref<1x128xf32, #tpu.memory_space<vmem>>, vector<1x128xf32>
    %4 = vector.broadcast %3 : vector<1x128xf32> to vector<256x128xf32>
    %5 = arith.addf %2, %4 : vector<256x128xf32>
    %cst_5 = arith.constant 0.000000e+00 : f32
    %6 = vector.broadcast %cst_5 : f32 to vector<256x128xf32>
    %7 = arith.maximumf %5, %6 : vector<256x128xf32>
    %8 = arith.truncf %7 : vector<256x128xf32> to vector<256x128xbf16>
    %c0_6 = arith.constant 0 : index
    %c0_7 = arith.constant 0 : index
    %9 = vector.load %arg4[%c0_6, %c0_7] : memref<128x128xbf16, #tpu.memory_space<vmem>>, vector<128x128xbf16>
    %cst_8 = arith.constant dense<0.000000e+00> : vector<256x128xf32>
    %10 = tpu.matmul %8, %9, %cst_8 {dimension_numbers = #tpu.dot_dimension_numbers<[1], [0], [0], [1], [0, 0, 1, 1], [], []>} : vector<256x128xbf16>, vector<128x128xbf16>, vector<256x128xf32> -> vector<256x128xf32>
    %c0_9 = arith.constant 0 : index
    %c0_10 = arith.constant 0 : index
    %11 = vector.load %arg5[%c0_9, %c0_10] : memref<1x128xf32, #tpu.memory_space<vmem>>, vector<1x128xf32>
    %12 = vector.broadcast %11 : vector<1x128xf32> to vector<256x128xf32>
    %13 = arith.addf %10, %12 : vector<256x128xf32>
    %cst_11 = arith.constant 0.000000e+00 : f32
    %14 = vector.broadcast %cst_11 : f32 to vector<256x128xf32>
    %15 = arith.maximumf %13, %14 : vector<256x128xf32>
    %16 = arith.truncf %15 : vector<256x128xf32> to vector<256x128xbf16>
    %c0_12 = arith.constant 0 : index
    %c0_13 = arith.constant 0 : index
    %17 = vector.load %arg6[%c0_12, %c0_13] : memref<128x128xbf16, #tpu.memory_space<vmem>>, vector<128x128xbf16>
    %cst_14 = arith.constant dense<0.000000e+00> : vector<256x128xf32>
    %18 = tpu.matmul %16, %17, %cst_14 {dimension_numbers = #tpu.dot_dimension_numbers<[1], [0], [0], [1], [0, 0, 1, 1], [], []>} : vector<256x128xbf16>, vector<128x128xbf16>, vector<256x128xf32> -> vector<256x128xf32>
    %c0_15 = arith.constant 0 : index
    %c0_16 = arith.constant 0 : index
    %19 = vector.load %arg7[%c0_15, %c0_16] : memref<1x128xf32, #tpu.memory_space<vmem>>, vector<1x128xf32>
    %20 = vector.broadcast %19 : vector<1x128xf32> to vector<256x128xf32>
    %21 = arith.addf %18, %20 : vector<256x128xf32>
    %c0_17 = arith.constant 0 : index
    %c0_18 = arith.constant 0 : index
    %22 = vector.load %arg8[%c0_17, %c0_18] : memref<256x128xf32, #tpu.memory_space<vmem>>, vector<256x128xf32>
    tpu.vector_store %arg8[%c0_17, %c0_18], %21 {strides = array<i32>} : memref<256x128xf32, #tpu.memory_space<vmem>>, vector<256x128xf32>,
    return
  }
  func.func @transform_0(%arg0: i32) -> (i32, i32) {
    %c0_i32 = arith.constant 0 : i32
    %c0_i32_0 = arith.constant 0 : i32
    return %arg0, %c0_i32 : i32, i32
  }
  func.func @transform_1(%arg0: i32) -> (i32, i32) {
    %c0_i32 = arith.constant 0 : i32
    %c0_i32_0 = arith.constant 0 : i32
    %c0_i32_1 = arith.constant 0 : i32
    return %c0_i32, %c0_i32_0 : i32, i32
  }
  func.func @transform_2(%arg0: i32) -> (i32, i32) {
    %c0_i32 = arith.constant 0 : i32
    %c0_i32_0 = arith.constant 0 : i32
    %c0_i32_1 = arith.constant 0 : i32
    return %c0_i32, %c0_i32_0 : i32, i32
  }
  func.func @transform_3(%arg0: i32) -> (i32, i32) {
    %c0_i32 = arith.constant 0 : i32
    %c0_i32_0 = arith.constant 0 : i32
    %c0_i32_1 = arith.constant 0 : i32
    return %c0_i32, %c0_i32_0 : i32, i32
  }
  func.func @transform_4(%arg0: i32) -> (i32, i32) {
    %c0_i32 = arith.constant 0 : i32
    %c0_i32_0 = arith.constant 0 : i32
    %c0_i32_1 = arith.constant 0 : i32
    return %c0_i32, %c0_i32_0 : i32, i32
  }
  func.func @transform_5(%arg0: i32) -> (i32, i32) {
    %c0_i32 = arith.constant 0 : i32
    %c0_i32_0 = arith.constant 0 : i32
    %c0_i32_1 = arith.constant 0 : i32
    return %c0_i32, %c0_i32_0 : i32, i32
  }
  func.func @transform_6(%arg0: i32) -> (i32, i32) {
    %c0_i32 = arith.constant 0 : i32
    %c0_i32_0 = arith.constant 0 : i32
    %c0_i32_1 = arith.constant 0 : i32
    return %c0_i32, %c0_i32_0 : i32, i32
  }
  func.func @transform_7(%arg0: i32) -> (i32, i32) {
    %c0_i32 = arith.constant 0 : i32
    %c0_i32_0 = arith.constant 0 : i32
    return %arg0, %c0_i32 : i32, i32
  }
}

</mosaic_0001>

<bundles_post_ra>
// kernel: tpu_custom_call.1
= control target key start
LH: loop header
LB: loop body
LE: loop exit
PB: predicated region body
PF: predicated region fallthrough
CT: control target
= control target key end

     0   :  { %vm197_vm0 = vcmask 1040384   ;;  %vm198_vm1 = vcmask 1041408   ;;  %v1281_v2 = vmov 65535   ;;  %vm148_vm2 = vcmask 23552   ;;  %s1569_s0 = inlined_call_operand.vmem [shape: bf16[256,3], index: 0, kind: input, shape index: {}]   ;;  %s1570_s1 = inlined_call_operand.vmem [shape: bf16[3,128], index: 1, kind: input, shape index: {}]   ;;  %s1571_s2 = inlined_call_operand.vmem [shape: f32[1,128], index: 2, kind: input, shape index: {}]   ;;  %s1572_s3 = inlined_call_operand.vmem [shape: bf16[128,128], index: 3, kind: input, shape index: {}]   ;;  %s1573_s4 = inlined_call_operand.vmem [shape: f32[1,128], index: 4, kind: input, shape index: {}]   ;;  %s1574_s5 = inlined_call_operand.vmem [shape: bf16[128,128], index: 5, kind: input, shape index: {}]   ;;  %s1575_s6 = inlined_call_operand.vmem [shape: f32[1,128], index: 6, kind: input, shape index: {}]   ;;  %s1576_s7 = inlined_call_operand.hbm [shape: f32[256,128], index: 7, kind: output, shape index: {}]  }
   0x1   :  { %v60_v0 = vld [vmem:[%s1570_s1] sm:$0x3]  ;;  %v199_v3 = vsel %vm197_vm0, 4294967295, %v1281_v2  ;;  %v1226_v6 = vld [vmem:[%s1569_s0 + $0x8] sm:$0xff]   ;;  %v1227_v7 = vld [vmem:[%s1569_s0 + $0x10] sm:$0xff]  }
   0x2   :  { %v1225_v1 = vld [vmem:[%s1569_s0] sm:$0xff]   ;;  %v200_v4 = vsel %vm198_vm1, %v199_v3, 0  ;;  %v1234_v9 = vld [vmem:[%s1569_s0 + $0x48] sm:$0xff]   ;;  %v1235_v10 = vld [vmem:[%s1569_s0 + $0x50] sm:$0xff]  }
   0x3   :  { %1091 = vmatprep.mubr.msk.bf16.mxu0 %vm148_vm2, %v1225_v1  ;;  %v202_v5 = vand.u32 %v200_v4, %v60_v0  ;;  %v1233_v8 = vld [vmem:[%s1569_s0 + $0x40] sm:$0xff]   ;;  %v1228_v11 = vld [vmem:[%s1569_s0 + $0x18] sm:$0xff]   ;;  %v1242_v16 = vld [vmem:[%s1572_s3 + $0x8] sm:$0xff]  }
   0x4   :  { %1107 = vmatprep.mubr.msk.bf16.mxu1 %vm148_vm2, %v1233_v8  ;;  %v1229_v12 = vld [vmem:[%s1569_s0 + $0x20] sm:$0xff]   ;;  %v1236_v13 = vld [vmem:[%s1569_s0 + $0x58] sm:$0xff]   ;;  %v1230_v17 = vld [vmem:[%s1569_s0 + $0x28] sm:$0xff]  }
   0x5   :  { %1089 = vmatprep.subr.bf16.mxu0 %v202_v5  ;;  %1219 = vmatprep.subr.bf16.mxu1 %v202_v5  ;;  %v1237_v14 = vld [vmem:[%s1569_s0 + $0x60] sm:$0xff]   ;;  %v1231_v18 = vld [vmem:[%s1569_s0 + $0x30] sm:$0xff]   ;;  %v1238_v19 = vld [vmem:[%s1569_s0 + $0x68] sm:$0xff]  }
   0x6   :  { %1090 = vmatpush3.bf16.msra.mxu0 %v202_v5  ;;  %1220 = vmatpush3.bf16.msra.mxu1 %v202_v5  ;;  %v1241_v15 = vld [vmem:[%s1572_s3] sm:$0xff]   ;;  %v1243_v20 = vld [vmem:[%s1572_s3 + $0x10] sm:$0xff]   ;;  %v1244_v22 = vld [vmem:[%s1572_s3 + $0x18] sm:$0xff]  }
   0x7   :  { %1123 = vmatprep.subr.bf16.mxu1 %v1241_v15  ;;  %v1239_v21 = vld [vmem:[%s1569_s0 + $0x70] sm:$0xff]   ;;  %v1232_v23 = vld [vmem:[%s1569_s0 + $0x38] sm:$0xff]  }
   0x9   :  { %1092 = vmatmul.mubr.msk.bf16.vlgmr.msra.gmra.mrb[0].mxu0 %vm148_vm2, %v1226_v6  ;;  %1108 = vmatmul.mubr.msk.bf16.vlgmr.msra.gmra.mrb[0].mxu1 %vm148_vm2, %v1234_v9 }
   0xa   :  { %1095 = vmatprep.mubr.msk.bf16.mxu0 %vm148_vm2, %v1227_v7  ;;  %1111 = vmatprep.mubr.msk.bf16.mxu1 %vm148_vm2, %v1235_v10 }
   0xb   :  { %1124 = vmatpush3.bf16.msra.mxu1 %v1241_v15 }
   0xc   :  { %1125 = vmatprep.subr.bf16.mxu1 %v1242_v16 }
   0xf   :  { %1126 = vmatpush3.bf16.msra.mxu1 %v1242_v16 }
  0x10   :  { %1127 = vmatprep.subr.bf16.mxu1 %v1243_v20 }
  0x11   :  { %1096 = vmatmul.mubr.msk.bf16.gmra.mrb[4].mxu0 %vm148_vm2, %v1228_v11  ;;  %1112 = vmatmul.mubr.msk.bf16.gmra.mrb[4].mxu1 %vm148_vm2, %v1236_v13 }
  0x12   :  { %1099 = vmatprep.mubr.msk.bf16.mxu0 %vm148_vm2, %v1229_v12  ;;  %1115 = vmatprep.mubr.msk.bf16.mxu1 %vm148_vm2, %v1237_v14 }
  0x13   :  { %1128 = vmatpush3.bf16.msra.mxu1 %v1243_v20 }
  0x19   :  { %1100 = vmatmul.mubr.msk.bf16.gmra.mrb[8].mxu0 %vm148_vm2, %v1230_v17  ;;  %1116 = vmatmul.mubr.msk.bf16.gmra.mrb[8].mxu1 %vm148_vm2, %v1238_v19 }
  0x1a   :  { %1103 = vmatprep.mubr.msk.bf16.mxu0 %vm148_vm2, %v1231_v18  ;;  %1119 = vmatprep.mubr.msk.bf16.mxu1 %vm148_vm2, %v1239_v21 }
  0x1b   :  { %12 = vsyncpa [#allocation3], 0  ;;  %1129 = vmatprep.subr.bf16.mxu1 %v1244_v22  ;;  %v1245_v24 = vld [vmem:[%s1572_s3 + $0x20] sm:$0xff]   ;;  %v1240_v25 = vld [vmem:[%s1569_s0 + $0x78] sm:$0xff]  }
  0x1c   :  { %1130 = vmatpush3.bf16.msra.mxu1 %v1244_v22  ;;  %v1246_v26 = vld [vmem:[%s1572_s3 + $0x28] sm:$0xff]   ;;  %v1247_v27 = vld [vmem:[%s1572_s3 + $0x30] sm:$0xff]   ;;  %v1248_v28 = vld [vmem:[%s1572_s3 + $0x38] sm:$0xff]  }
  0x1d   :  { %1131 = vmatprep.subr.bf16.mxu1 %v1245_v24  ;;  %v1249_v29 = vld [vmem:[%s1574_s5] sm:$0xff]   ;;  %v1250_v30 = vld [vmem:[%s1574_s5 + $0x8] sm:$0xff]   ;;  %v1251_v31 = vld [vmem:[%s1574_s5 + $0x10] sm:$0xff]  }
  0x1e   :  { %1171 = vmatprep.subr.bf16.mxu0 %v1249_v29  ;;  %v1252_v32 = vld [vmem:[%s1574_s5 + $0x18] sm:$0xff]   ;;  %v1253_v33 = vld [vmem:[%s1574_s5 + $0x20] sm:$0xff]   ;;  %v1254_v34 = vld [vmem:[%s1574_s5 + $0x28] sm:$0xff]  }
  0x1f   :  { %1172 = vmatpush3.bf16.msra.mxu0 %v1249_v29  ;;  %v1437_v35 = vld [vmem:[%s1571_s2] ss:$0 sm:$0xff] }
  0x20   :  { %1132 = vmatpush3.bf16.msra.mxu1 %v1245_v24  ;;  %1173 = vmatprep.subr.bf16.mxu0 %v1250_v30 }
  0x21   :  { %1104 = vmatmul.mubr.msk.bf16.gmra.mrb[12].mxu0 %vm148_vm2, %v1232_v23  ;;  %1120 = vmatmul.mubr.msk.bf16.gmra.mrb[12].mxu1 %vm148_vm2, %v1240_v25 }
  0x22   :  { %1133 = vmatprep.subr.bf16.mxu1 %v1246_v26 }
  0x23   :  { %1174 = vmatpush3.bf16.msra.mxu0 %v1250_v30 }
  0x24   :  { %1134 = vmatpush3.bf16.msra.mxu1 %v1246_v26  ;;  %1175 = vmatprep.subr.bf16.mxu0 %v1251_v31 }
  0x25   :  { %1135 = vmatprep.subr.bf16.mxu1 %v1247_v27 }
  0x27   :  { %1176 = vmatpush3.bf16.msra.mxu0 %v1251_v31 }
  0x28   :  { %1136 = vmatpush3.bf16.msra.mxu1 %v1247_v27  ;;  %1177 = vmatprep.subr.bf16.mxu0 %v1252_v32 }
  0x29   :  { %1137 = vmatprep.subr.bf16.mxu1 %v1248_v28 }
  0x2b   :  { %1178 = vmatpush3.bf16.msra.mxu0 %v1252_v32 }
  0x2c   :  { %1138 = vmatpush3.bf16.msra.mxu1 %v1248_v28  ;;  %1179 = vmatprep.subr.bf16.mxu0 %v1253_v33 }
  0x2f   :  { %1180 = vmatpush3.bf16.msra.mxu0 %v1253_v33 }
  0x30   :  { %1181 = vmatprep.subr.bf16.mxu0 %v1254_v34 }
  0x33   :  { %1182 = vmatpush3.bf16.msra.mxu0 %v1254_v34 }
  0xdc   :  { %v1093_v36 = vpop.f32.mrb[0].mxu0  ;;  %v1109_v43 = vpop.f32.mrb[0].mxu1 }
  0xdd   :  { %v247_v37 = vadd.f32 %v1093_v36, %v1437_v35  ;;  %v238_v38 = vpop.f32.mrb[1].mxu0  ;;  %v311_v45 = vadd.f32 %v1109_v43, %v1437_v35  ;;  %v302_v46 = vpop.f32.mrb[1].mxu1 }
  0xde   :  { %v239_v39 = vadd.f32 %v1437_v35, %v238_v38  ;;  %v1094_v40 = vpop.f32.mrb[2].mxu0  ;;  %v303_v49 = vadd.f32 %v1437_v35, %v302_v46  ;;  %v1110_v50 = vpop.f32.mrb[2].mxu1 }
  0xdf   :  { %v250_v41 = vadd.f32 %v1094_v40, %v1437_v35  ;;  %v241_v42 = vpop.f32.mrb[3].mxu0  ;;  %v367_v47 = vmax.f32 %v247_v37, 0.0  ;;  %v383_v53 = vmax.f32 %v311_v45, 0.0  ;;  %v314_v54 = vadd.f32 %v1110_v50, %v1437_v35  ;;  %v305_v55 = vpop.f32.mrb[3].mxu1 }
  0xe0   :  { %v242_v44 = vadd.f32 %v1437_v35, %v241_v42  ;;  %v365_v51 = vmax.f32 %v239_v39, 0.0  ;;  %v381_v57 = vmax.f32 %v303_v49, 0.0  ;;  %v306_v58 = vadd.f32 %v1437_v35, %v305_v55 }
  0xe1   :  { %v368_v48 = vmax.f32 %v250_v41, 0.0  ;;  %v384_v61 = vmax.f32 %v314_v54, 0.0 }
  0xe2   :  { %v366_v52 = vmax.f32 %v242_v44, 0.0  ;;  %v382_v0 = vmax.f32 %v306_v58, 0.0 }
  0xe3   :  { %v398_v56 = vpack.c.bf16 %v368_v48, %v367_v47  ;;  %v1449_v3 = vpack.c.bf16 %v384_v61, %v383_v53 }
  0xe4   :  { %v397_v59 = vpack.c.bf16 %v366_v52, %v365_v51  ;;  %v1097_v60 = vpop.f32.mrb[4].mxu0  ;;  %v1452_v6 = vpack.c.bf16 %v382_v0, %v381_v57  ;;  %v1113_v7 = vpop.f32.mrb[4].mxu1 }
  0xe5   :  { %v263_v62 = vadd.f32 %v1097_v60, %v1437_v35  ;;  %v254_v63 = vpop.f32.mrb[5].mxu0  ;;  %v327_v9 = vadd.f32 %v1113_v7, %v1437_v35  ;;  %v318_v10 = vpop.f32.mrb[5].mxu1 }
  0xe6   :  { %v255_v1 = vadd.f32 %v1437_v35, %v254_v63  ;;  %v1098_v2 = vpop.f32.mrb[6].mxu0  ;;  %1139 = vmatprep.mubr.bf16.mxu1 %v397_v59  ;;  %v319_v13 = vadd.f32 %v1437_v35, %v318_v10  ;;  %v1114_v14 = vpop.f32.mrb[6].mxu1 }
  0xe7   :  { %v266_v4 = vadd.f32 %v1098_v2, %v1437_v35  ;;  %v257_v5 = vpop.f32.mrb[7].mxu0  ;;  %1140 = vmatmul.mubr.bf16.vlgmr.msra.gmra.mrb[16].mxu1 %v398_v56  ;;  %v371_v11 = vmax.f32 %v263_v62, 0.0  ;;  %v387_v17 = vmax.f32 %v327_v9, 0.0  ;;  %v330_v18 = vadd.f32 %v1114_v14, %v1437_v35  ;;  %v321_v19 = vpop.f32.mrb[7].mxu1 }
  0xe8   :  { %v258_v8 = vadd.f32 %v1437_v35, %v257_v5  ;;  %v369_v15 = vmax.f32 %v255_v1, 0.0  ;;  %v385_v21 = vmax.f32 %v319_v13, 0.0  ;;  %v322_v22 = vadd.f32 %v1437_v35, %v321_v19 }
  0xe9   :  { %v372_v12 = vmax.f32 %v266_v4, 0.0  ;;  %v388_v25 = vmax.f32 %v330_v18, 0.0 }
  0xea   :  { %v370_v16 = vmax.f32 %v258_v8, 0.0  ;;  %v386_v28 = vmax.f32 %v322_v22, 0.0 }
  0xeb   :  { %v400_v20 = vpack.c.bf16 %v372_v12, %v371_v11  ;;  %v408_v31 = vpack.c.bf16 %v388_v25, %v387_v17 }
  0xec   :  { %v399_v23 = vpack.c.bf16 %v370_v16, %v369_v15  ;;  %v1101_v24 = vpop.f32.mrb[8].mxu0  ;;  %v407_v34 = vpack.c.bf16 %v386_v28, %v385_v21  ;;  %v1117_v36 = vpop.f32.mrb[8].mxu1 }
  0xed   :  { %v279_v26 = vadd.f32 %v1101_v24, %v1437_v35  ;;  %v270_v27 = vpop.f32.mrb[9].mxu0  ;;  %v343_v38 = vadd.f32 %v1117_v36, %v1437_v35  ;;  %v334_v39 = vpop.f32.mrb[9].mxu1 }
  0xee   :  { %v271_v29 = vadd.f32 %v1437_v35, %v270_v27  ;;  %v1102_v30 = vpop.f32.mrb[10].mxu0  ;;  %1143 = vmatprep.mubr.bf16.mxu1 %v399_v23  ;;  %v335_v42 = vadd.f32 %v1437_v35, %v334_v39  ;;  %v1118_v43 = vpop.f32.mrb[10].mxu1  ;;  %v1256_v23 = vld [vmem:[%s1574_s5 + $0x38] sm:$0xff]  }
  0xef   :  { %v282_v32 = vadd.f32 %v1102_v30, %v1437_v35  ;;  %v273_v33 = vpop.f32.mrb[11].mxu0  ;;  %1144 = vmatmul.mubr.bf16.gmra.mrb[20].mxu1 %v400_v20  ;;  %v375_v40 = vmax.f32 %v279_v26, 0.0  ;;  %v391_v46 = vmax.f32 %v343_v38, 0.0  ;;  %v346_v47 = vadd.f32 %v1118_v43, %v1437_v35  ;;  %v337_v48 = vpop.f32.mrb[11].mxu1 }
  0xf0   :  { %v274_v37 = vadd.f32 %v1437_v35, %v273_v33  ;;  %v373_v44 = vmax.f32 %v271_v29, 0.0  ;;  %v389_v50 = vmax.f32 %v335_v42, 0.0  ;;  %v338_v51 = vadd.f32 %v1437_v35, %v337_v48 }
  0xf1   :  { %v376_v41 = vmax.f32 %v282_v32, 0.0  ;;  %v392_v54 = vmax.f32 %v346_v47, 0.0 }
  0xf2   :  { %v374_v45 = vmax.f32 %v274_v37, 0.0  ;;  %v390_v57 = vmax.f32 %v338_v51, 0.0 }
  0xf3   :  { %v402_v49 = vpack.c.bf16 %v376_v41, %v375_v40  ;;  %v410_v60 = vpack.c.bf16 %v392_v54, %v391_v46 }
  0xf4   :  { %v401_v52 = vpack.c.bf16 %v374_v45, %v373_v44  ;;  %v1105_v53 = vpop.f32.mrb[12].mxu0  ;;  %v409_v63 = vpack.c.bf16 %v390_v57, %v389_v50  ;;  %v1121_v0 = vpop.f32.mrb[12].mxu1 }
  0xf5   :  { %v295_v55 = vadd.f32 %v1105_v53, %v1437_v35  ;;  %v286_v56 = vpop.f32.mrb[13].mxu0  ;;  %v359_v2 = vadd.f32 %v1121_v0, %v1437_v35  ;;  %v350_v4 = vpop.f32.mrb[13].mxu1 }
  0xf6   :  { %v287_v58 = vadd.f32 %v1437_v35, %v286_v56  ;;  %v1106_v59 = vpop.f32.mrb[14].mxu0  ;;  %1147 = vmatprep.mubr.bf16.mxu1 %v401_v52  ;;  %v351_v8 = vadd.f32 %v1437_v35, %v350_v4  ;;  %v1122_v9 = vpop.f32.mrb[14].mxu1 }
  0xf7   :  { %v298_v61 = vadd.f32 %v1106_v59, %v1437_v35  ;;  %v289_v62 = vpop.f32.mrb[15].mxu0  ;;  %1148 = vmatmul.mubr.bf16.gmra.mrb[24].mxu1 %v402_v49  ;;  %v379_v5 = vmax.f32 %v295_v55, 0.0  ;;  %v395_v12 = vmax.f32 %v359_v2, 0.0  ;;  %v362_v13 = vadd.f32 %v1122_v9, %v1437_v35  ;;  %v353_v14 = vpop.f32.mrb[15].mxu1 }
  0xf8   :  { %v290_v1 = vadd.f32 %v1437_v35, %v289_v62  ;;  %v377_v10 = vmax.f32 %v287_v58, 0.0  ;;  %v393_v16 = vmax.f32 %v351_v8, 0.0  ;;  %v354_v17 = vadd.f32 %v1437_v35, %v353_v14  ;;  %v1255_v35 = vld [vmem:[%s1574_s5 + $0x30] sm:$0xff]  }
  0xf9   :  { %v380_v7 = vmax.f32 %v298_v61, 0.0  ;;  %v396_v19 = vmax.f32 %v362_v13, 0.0  ;;  %1183 = vmatprep.subr.bf16.mxu0 %v1255_v35 }
  0xfa   :  { %v378_v11 = vmax.f32 %v290_v1, 0.0  ;;  %v394_v20 = vmax.f32 %v354_v17, 0.0  ;;  %1184 = vmatpush3.bf16.msra.mxu0 %v1255_v35 }
  0xfb   :  { %v404_v15 = vpack.c.bf16 %v380_v7, %v379_v5  ;;  %v412_v21 = vpack.c.bf16 %v396_v19, %v395_v12  ;;  %1185 = vmatprep.subr.bf16.mxu0 %v1256_v23 }
  0xfc   :  { %v403_v18 = vpack.c.bf16 %v378_v11, %v377_v10  ;;  %v411_v22 = vpack.c.bf16 %v394_v20, %v393_v16 }
  0xfe   :  { %1151 = vmatprep.mubr.bf16.mxu1 %v403_v18  ;;  %1186 = vmatpush3.bf16.msra.mxu0 %v1256_v23 }
  0xff   :  { %1152 = vmatmul.mubr.bf16.gmra.mrb[28].mxu1 %v404_v15 }
 0x100   :  { %1155 = vmatprep.mubr.bf16.mxu1 %v1452_v6 }
 0x107   :  { %1156 = vmatmul.mubr.bf16.gmra.mrb[32].mxu1 %v1449_v3  ;;  %v1486_v3 = vld [vmem:[%s1573_s4] ss:$0 sm:$0xff] }
 0x108   :  { %1159 = vmatprep.mubr.bf16.mxu1 %v407_v34 }
 0x10f   :  { %1160 = vmatmul.mubr.bf16.gmra.mrb[36].mxu1 %v408_v31 }
 0x110   :  { %1163 = vmatprep.mubr.bf16.mxu1 %v409_v63 }
 0x117   :  { %1164 = vmatmul.mubr.bf16.gmra.mrb[40].mxu1 %v410_v60 }
 0x118   :  { %1167 = vmatprep.mubr.bf16.mxu1 %v411_v22 }
 0x11f   :  { %1168 = vmatmul.mubr.bf16.gmra.mrb[44].mxu1 %v412_v21 }
 0x1ba   :  { %v1141_v6 = vpop.f32.mrb[16].mxu1 }
 0x1bb   :  { %v527_v24 = vadd.f32 %v1141_v6, %v1486_v3  ;;  %v518_v25 = vpop.f32.mrb[17].mxu1 }
 0x1bc   :  { %v519_v26 = vadd.f32 %v1486_v3, %v518_v25  ;;  %v1142_v27 = vpop.f32.mrb[18].mxu1 }
 0x1bd   :  { %v530_v28 = vadd.f32 %v1142_v27, %v1486_v3  ;;  %v521_v29 = vpop.f32.mrb[19].mxu1  ;;  %v647_v31 = vmax.f32 %v527_v24, 0.0 }
 0x1be   :  { %v522_v30 = vadd.f32 %v1486_v3, %v521_v29  ;;  %v645_v33 = vmax.f32 %v519_v26, 0.0 }
 0x1bf   :  { %v648_v32 = vmax.f32 %v530_v28, 0.0 }
 0x1c0   :  { %v646_v34 = vmax.f32 %v522_v30, 0.0 }
 0x1c1   :  { %v678_v36 = vpack.c.bf16 %v648_v32, %v647_v31 }
 0x1c2   :  { %v677_v37 = vpack.c.bf16 %v646_v34, %v645_v33  ;;  %v1145_v38 = vpop.f32.mrb[20].mxu1 }
 0x1c3   :  { %v543_v39 = vadd.f32 %v1145_v38, %v1486_v3  ;;  %v534_v40 = vpop.f32.mrb[21].mxu1 }
 0x1c4   :  { %v535_v41 = vadd.f32 %v1486_v3, %v534_v40  ;;  %v1146_v42 = vpop.f32.mrb[22].mxu1  ;;  %1187 = vmatprep.mubr.bf16.mxu0 %v677_v37 }
 0x1c5   :  { %v546_v43 = vadd.f32 %v1146_v42, %v1486_v3  ;;  %v537_v44 = vpop.f32.mrb[23].mxu1  ;;  %1188 = vmatmul.mubr.bf16.vlgmr.msra.gmra.mrb[16].mxu0 %v678_v36  ;;  %v651_v46 = vmax.f32 %v543_v39, 0.0 }
 0x1c6   :  { %v538_v45 = vadd.f32 %v1486_v3, %v537_v44  ;;  %v649_v48 = vmax.f32 %v535_v41, 0.0 }
 0x1c7   :  { %v652_v47 = vmax.f32 %v546_v43, 0.0 }
 0x1c8   :  { %v650_v49 = vmax.f32 %v538_v45, 0.0 }
 0x1c9   :  { %v680_v50 = vpack.c.bf16 %v652_v47, %v651_v46 }
 0x1ca   :  { %v679_v51 = vpack.c.bf16 %v650_v49, %v649_v48  ;;  %v1149_v52 = vpop.f32.mrb[24].mxu1 }
 0x1cb   :  { %v559_v53 = vadd.f32 %v1149_v52, %v1486_v3  ;;  %v550_v54 = vpop.f32.mrb[25].mxu1 }
 0x1cc   :  { %v551_v55 = vadd.f32 %v1486_v3, %v550_v54  ;;  %v1150_v56 = vpop.f32.mrb[26].mxu1  ;;  %1191 = vmatprep.mubr.bf16.mxu0 %v679_v51 }
 0x1cd   :  { %v562_v57 = vadd.f32 %v1150_v56, %v1486_v3  ;;  %v553_v58 = vpop.f32.mrb[27].mxu1  ;;  %1192 = vmatmul.mubr.bf16.gmra.mrb[20].mxu0 %v680_v50  ;;  %v655_v60 = vmax.f32 %v559_v53, 0.0 }
 0x1ce   :  { %v554_v59 = vadd.f32 %v1486_v3, %v553_v58  ;;  %v653_v62 = vmax.f32 %v551_v55, 0.0 }
 0x1cf   :  { %v656_v61 = vmax.f32 %v562_v57, 0.0 }
 0x1d0   :  { %v654_v63 = vmax.f32 %v554_v59, 0.0 }
 0x1d1   :  { %v682_v0 = vpack.c.bf16 %v656_v61, %v655_v60 }
 0x1d2   :  { %v681_v1 = vpack.c.bf16 %v654_v63, %v653_v62  ;;  %v1153_v2 = vpop.f32.mrb[28].mxu1 }
 0x1d3   :  { %v575_v4 = vadd.f32 %v1153_v2, %v1486_v3  ;;  %v566_v5 = vpop.f32.mrb[29].mxu1 }
 0x1d4   :  { %v567_v7 = vadd.f32 %v1486_v3, %v566_v5  ;;  %v1154_v8 = vpop.f32.mrb[30].mxu1  ;;  %1195 = vmatprep.mubr.bf16.mxu0 %v681_v1 }
 0x1d5   :  { %v578_v9 = vadd.f32 %v1154_v8, %v1486_v3  ;;  %v569_v10 = vpop.f32.mrb[31].mxu1  ;;  %1196 = vmatmul.mubr.bf16.gmra.mrb[24].mxu0 %v682_v0  ;;  %v659_v12 = vmax.f32 %v575_v4, 0.0 }
 0x1d6   :  { %v570_v11 = vadd.f32 %v1486_v3, %v569_v10  ;;  %v657_v14 = vmax.f32 %v567_v7, 0.0 }
 0x1d7   :  { %v660_v13 = vmax.f32 %v578_v9, 0.0 }
 0x1d8   :  { %v658_v15 = vmax.f32 %v570_v11, 0.0  ;;  %v1523_v11 = vld [vmem:[%s1575_s6] ss:$0 sm:$0xff]  ;;  %s1282_s6 = smov [#allocation2]  }
 0x1d9   :  { %v684_v16 = vpack.c.bf16 %v660_v13, %v659_v12  ;;  %s962_s19 = sshll.u32 %s1282_s6, 4  ;;  %s963_s19 = int_to_ptr.vmem [resolvable:$true] %s962_s19 }
 0x1da   :  { %v683_v17 = vpack.c.bf16 %v658_v15, %v657_v14  ;;  %v1157_v18 = vpop.f32.mrb[32].mxu1  ;;  %s1257_s20 = scalar_lea.vmem %s963_s19, 4096  ;;  %p1262_p1 = scmp.lt.s32.totalorder %s963_s19, %s963_s19 }
 0x1db   :  { %v591_v19 = vadd.f32 %v1157_v18, %v1486_v3  ;;  %v582_v20 = vpop.f32.mrb[33].mxu1  ;;  %p1258_p0 = scmp.ne.s32.totalorder %s963_s19, %s1257_s20  ;;  %p1263_p2 = scmp.lt.s32.totalorder %s1257_s20, %s1257_s20 }
 0x1dc   :  { %v583_v21 = vadd.f32 %v1486_v3, %v582_v20  ;;  %v1158_v22 = vpop.f32.mrb[34].mxu1  ;;  %1199 = vmatprep.mubr.bf16.mxu0 %v683_v17 }
 0x1dd   :  { %v594_v35 = vadd.f32 %v1158_v22, %v1486_v3  ;;  %v585_v23 = vpop.f32.mrb[35].mxu1  ;;  %1200 = vmatmul.mubr.bf16.gmra.mrb[28].mxu0 %v684_v16  ;;  %v663_v24 = vmax.f32 %v591_v19, 0.0  ;;  %p1264_p3 = por %p1263_p2, %p1262_p1 }
 0x1de   :  { %v586_v6 = vadd.f32 %v1486_v3, %v585_v23  ;;  %v661_v26 = vmax.f32 %v583_v21, 0.0 }
 0x1df   :  { %v664_v25 = vmax.f32 %v594_v35, 0.0  ;;  %p1265_p4 = pnand %p1264_p3, %p1258_p0 }
 0x1e0   :  { %v662_v27 = vmax.f32 %v586_v6, 0.0 }
 0x1e1   :  { %v686_v28 = vpack.c.bf16 %v664_v25, %v663_v24 }
 0x1e2   :  { %v685_v29 = vpack.c.bf16 %v662_v27, %v661_v26  ;;  %v1161_v30 = vpop.f32.mrb[36].mxu1 }
 0x1e3   :  { %v607_v31 = vadd.f32 %v1161_v30, %v1486_v3  ;;  %v598_v32 = vpop.f32.mrb[37].mxu1 }
 0x1e4   :  { %v599_v33 = vadd.f32 %v1486_v3, %v598_v32  ;;  %v1162_v34 = vpop.f32.mrb[38].mxu1  ;;  %1203 = vmatprep.mubr.bf16.mxu0 %v685_v29 }
 0x1e5   :  { %v610_v36 = vadd.f32 %v1162_v34, %v1486_v3  ;;  %v601_v37 = vpop.f32.mrb[39].mxu1  ;;  %1204 = vmatmul.mubr.bf16.gmra.mrb[32].mxu0 %v686_v28  ;;  %v667_v39 = vmax.f32 %v607_v31, 0.0 }
 0x1e6   :  { %v602_v38 = vadd.f32 %v1486_v3, %v601_v37  ;;  %v665_v41 = vmax.f32 %v599_v33, 0.0 }
 0x1e7   :  { %v668_v40 = vmax.f32 %v610_v36, 0.0 }
 0x1e8   :  { %v666_v42 = vmax.f32 %v602_v38, 0.0 }
 0x1e9   :  { %v688_v43 = vpack.c.bf16 %v668_v40, %v667_v39 }
 0x1ea   :  { %v687_v44 = vpack.c.bf16 %v666_v42, %v665_v41  ;;  %v1165_v45 = vpop.f32.mrb[40].mxu1 }
 0x1eb   :  { %v623_v46 = vadd.f32 %v1165_v45, %v1486_v3  ;;  %v614_v47 = vpop.f32.mrb[41].mxu1 }
 0x1ec   :  { %v615_v48 = vadd.f32 %v1486_v3, %v614_v47  ;;  %v1166_v49 = vpop.f32.mrb[42].mxu1  ;;  %1207 = vmatprep.mubr.bf16.mxu0 %v687_v44 }
 0x1ed   :  { %v626_v50 = vadd.f32 %v1166_v49, %v1486_v3  ;;  %v617_v51 = vpop.f32.mrb[43].mxu1  ;;  %1208 = vmatmul.mubr.bf16.gmra.mrb[36].mxu0 %v688_v43  ;;  %v671_v53 = vmax.f32 %v623_v46, 0.0 }
 0x1ee   :  { %v618_v52 = vadd.f32 %v1486_v3, %v617_v51  ;;  %v669_v55 = vmax.f32 %v615_v48, 0.0 }
 0x1ef   :  { %v672_v54 = vmax.f32 %v626_v50, 0.0 }
 0x1f0   :  { %v670_v56 = vmax.f32 %v618_v52, 0.0 }
 0x1f1   :  { %v690_v57 = vpack.c.bf16 %v672_v54, %v671_v53 }
 0x1f2   :  { %v689_v58 = vpack.c.bf16 %v670_v56, %v669_v55  ;;  %v1169_v59 = vpop.f32.mrb[44].mxu1 }
 0x1f3   :  { %v639_v60 = vadd.f32 %v1169_v59, %v1486_v3  ;;  %v630_v61 = vpop.f32.mrb[45].mxu1 }
 0x1f4   :  { %v631_v62 = vadd.f32 %v1486_v3, %v630_v61  ;;  %v1170_v63 = vpop.f32.mrb[46].mxu1  ;;  %1211 = vmatprep.mubr.bf16.mxu0 %v689_v58 }
 0x1f5   :  { %v642_v0 = vadd.f32 %v1170_v63, %v1486_v3  ;;  %v633_v1 = vpop.f32.mrb[47].mxu1  ;;  %1212 = vmatmul.mubr.bf16.gmra.mrb[40].mxu0 %v690_v57  ;;  %v675_v4 = vmax.f32 %v639_v60, 0.0 }
 0x1f6   :  { %v634_v2 = vadd.f32 %v1486_v3, %v633_v1  ;;  %v673_v7 = vmax.f32 %v631_v62, 0.0 }
 0x1f7   :  { %v676_v5 = vmax.f32 %v642_v0, 0.0 }
 0x1f8   :  { %v674_v8 = vmax.f32 %v634_v2, 0.0 }
 0x1f9   :  { %v692_v9 = vpack.c.bf16 %v676_v5, %v675_v4 }
 0x1fa   :  { %v691_v10 = vpack.c.bf16 %v674_v8, %v673_v7 }
 0x1fc   :  { %1215 = vmatprep.mubr.bf16.mxu0 %v691_v10 }
 0x1fd   :  { %1216 = vmatmul.mubr.bf16.gmra.mrb[44].mxu0 %v692_v9 }
 0x298   :  { %v1189_v12 = vpop.f32.mrb[16].mxu0 }
 0x299   :  { %v807_v13 = vadd.f32 %v1189_v12, %v1523_v11  ;;  %v798_v14 = vpop.f32.mrb[17].mxu0 }
 0x29a   :  { %v799_v15 = vadd.f32 %v1523_v11, %v798_v14  ;;  %v1190_v3 = vpop.f32.mrb[18].mxu0 }
 0x29b   :  { %927 = vst [vmem:[#allocation2 + $0x10] sm:$0xff] %v807_v13  ;;  %v810_v16 = vadd.f32 %v1190_v3, %v1523_v11  ;;  %v801_v17 = vpop.f32.mrb[19].mxu0 }
 0x29c   :  { %925 = vst [vmem:[#allocation2] sm:$0xff] %v799_v15  ;;  %v802_v18 = vadd.f32 %v1523_v11, %v801_v17 }
 0x29d   :  { %928 = vst [vmem:[#allocation2 + $0x18] sm:$0xff] %v810_v16 }
 0x29e   :  { %926 = vst [vmem:[#allocation2 + $0x8] sm:$0xff] %v802_v18 }
 0x2a0   :  { %v1193_v19 = vpop.f32.mrb[20].mxu0 }
 0x2a1   :  { %v823_v20 = vadd.f32 %v1193_v19, %v1523_v11  ;;  %v814_v21 = vpop.f32.mrb[21].mxu0 }
 0x2a2   :  { %v815_v22 = vadd.f32 %v1523_v11, %v814_v21  ;;  %v1194_v35 = vpop.f32.mrb[22].mxu0 }
 0x2a3   :  { %931 = vst [vmem:[#allocation2 + $0x30] sm:$0xff] %v823_v20  ;;  %v826_v23 = vadd.f32 %v1194_v35, %v1523_v11  ;;  %v817_v6 = vpop.f32.mrb[23].mxu0 }
 0x2a4   :  { %929 = vst [vmem:[#allocation2 + $0x20] sm:$0xff] %v815_v22  ;;  %v818_v24 = vadd.f32 %v1523_v11, %v817_v6 }
 0x2a5   :  { %932 = vst [vmem:[#allocation2 + $0x38] sm:$0xff] %v826_v23 }
 0x2a6   :  { %930 = vst [vmem:[#allocation2 + $0x28] sm:$0xff] %v818_v24 }
 0x2a8   :  { %v1197_v25 = vpop.f32.mrb[24].mxu0 }
 0x2a9   :  { %v839_v26 = vadd.f32 %v1197_v25, %v1523_v11  ;;  %v830_v27 = vpop.f32.mrb[25].mxu0 }
 0x2aa   :  { %v831_v28 = vadd.f32 %v1523_v11, %v830_v27  ;;  %v1198_v29 = vpop.f32.mrb[26].mxu0 }
 0x2ab   :  { %935 = vst [vmem:[#allocation2 + $0x50] sm:$0xff] %v839_v26  ;;  %v842_v30 = vadd.f32 %v1198_v29, %v1523_v11  ;;  %v833_v31 = vpop.f32.mrb[27].mxu0 }
 0x2ac   :  { %933 = vst [vmem:[#allocation2 + $0x40] sm:$0xff] %v831_v28  ;;  %v834_v32 = vadd.f32 %v1523_v11, %v833_v31 }
 0x2ad   :  { %936 = vst [vmem:[#allocation2 + $0x58] sm:$0xff] %v842_v30 }
 0x2ae   :  { %934 = vst [vmem:[#allocation2 + $0x48] sm:$0xff] %v834_v32 }
 0x2b0   :  { %v1201_v33 = vpop.f32.mrb[28].mxu0 }
 0x2b1   :  { %v855_v34 = vadd.f32 %v1201_v33, %v1523_v11  ;;  %v846_v36 = vpop.f32.mrb[29].mxu0 }
 0x2b2   :  { %v847_v37 = vadd.f32 %v1523_v11, %v846_v36  ;;  %v1202_v38 = vpop.f32.mrb[30].mxu0 }
 0x2b3   :  { %939 = vst [vmem:[#allocation2 + $0x70] sm:$0xff] %v855_v34  ;;  %v858_v39 = vadd.f32 %v1202_v38, %v1523_v11  ;;  %v849_v40 = vpop.f32.mrb[31].mxu0 }
 0x2b4   :  { %937 = vst [vmem:[#allocation2 + $0x60] sm:$0xff] %v847_v37  ;;  %v850_v41 = vadd.f32 %v1523_v11, %v849_v40 }
 0x2b5   :  { %940 = vst [vmem:[#allocation2 + $0x78] sm:$0xff] %v858_v39 }
 0x2b6   :  { %938 = vst [vmem:[#allocation2 + $0x68] sm:$0xff] %v850_v41 }
 0x2b8   :  { %v1205_v42 = vpop.f32.mrb[32].mxu0 }
 0x2b9   :  { %v871_v43 = vadd.f32 %v1205_v42, %v1523_v11  ;;  %v862_v44 = vpop.f32.mrb[33].mxu0 }
 0x2ba   :  { %v863_v45 = vadd.f32 %v1523_v11, %v862_v44  ;;  %v1206_v46 = vpop.f32.mrb[34].mxu0 }
 0x2bb   :  { %943 = vst [vmem:[#allocation2 + $0x90] sm:$0xff] %v871_v43  ;;  %v874_v47 = vadd.f32 %v1206_v46, %v1523_v11  ;;  %v865_v48 = vpop.f32.mrb[35].mxu0 }
 0x2bc   :  { %941 = vst [vmem:[#allocation2 + $0x80] sm:$0xff] %v863_v45  ;;  %v866_v49 = vadd.f32 %v1523_v11, %v865_v48 }
 0x2bd   :  { %944 = vst [vmem:[#allocation2 + $0x98] sm:$0xff] %v874_v47 }
 0x2be   :  { %942 = vst [vmem:[#allocation2 + $0x88] sm:$0xff] %v866_v49 }
 0x2c0   :  { %v1209_v50 = vpop.f32.mrb[36].mxu0 }
 0x2c1   :  { %v887_v51 = vadd.f32 %v1209_v50, %v1523_v11  ;;  %v878_v52 = vpop.f32.mrb[37].mxu0 }
 0x2c2   :  { %v879_v53 = vadd.f32 %v1523_v11, %v878_v52  ;;  %v1210_v54 = vpop.f32.mrb[38].mxu0 }
 0x2c3   :  { %947 = vst [vmem:[#allocation2 + $0xb0] sm:$0xff] %v887_v51  ;;  %v890_v55 = vadd.f32 %v1210_v54, %v1523_v11  ;;  %v881_v56 = vpop.f32.mrb[39].mxu0 }
 0x2c4   :  { %945 = vst [vmem:[#allocation2 + $0xa0] sm:$0xff] %v879_v53  ;;  %v882_v57 = vadd.f32 %v1523_v11, %v881_v56 }
 0x2c5   :  { %948 = vst [vmem:[#allocation2 + $0xb8] sm:$0xff] %v890_v55 }
 0x2c6   :  { %946 = vst [vmem:[#allocation2 + $0xa8] sm:$0xff] %v882_v57 }
 0x2c8   :  { %v1213_v58 = vpop.f32.mrb[40].mxu0 }
 0x2c9   :  { %v903_v59 = vadd.f32 %v1213_v58, %v1523_v11  ;;  %v894_v60 = vpop.f32.mrb[41].mxu0 }
 0x2ca   :  { %v895_v61 = vadd.f32 %v1523_v11, %v894_v60  ;;  %v1214_v62 = vpop.f32.mrb[42].mxu0 }
 0x2cb   :  { %951 = vst [vmem:[#allocation2 + $0xd0] sm:$0xff] %v903_v59  ;;  %v906_v63 = vadd.f32 %v1214_v62, %v1523_v11  ;;  %v897_v0 = vpop.f32.mrb[43].mxu0 }
 0x2cc   :  { %949 = vst [vmem:[#allocation2 + $0xc0] sm:$0xff] %v895_v61  ;;  %v898_v1 = vadd.f32 %v1523_v11, %v897_v0 }
 0x2cd   :  { %952 = vst [vmem:[#allocation2 + $0xd8] sm:$0xff] %v906_v63 }
 0x2ce   :  { %950 = vst [vmem:[#allocation2 + $0xc8] sm:$0xff] %v898_v1 }
 0x2d0   :  { %v1217_v2 = vpop.f32.mrb[44].mxu0 }
 0x2d1   :  { %v919_v4 = vadd.f32 %v1217_v2, %v1523_v11  ;;  %v910_v5 = vpop.f32.mrb[45].mxu0 }
 0x2d2   :  { %v911_v7 = vadd.f32 %v1523_v11, %v910_v5  ;;  %v1218_v8 = vpop.f32.mrb[46].mxu0 }
 0x2d3   :  { %955 = vst [vmem:[#allocation2 + $0xf0] sm:$0xff] %v919_v4  ;;  %v922_v9 = vadd.f32 %v1218_v8, %v1523_v11  ;;  %v913_v10 = vpop.f32.mrb[47].mxu0 }
 0x2d4   :  { %953 = vst [vmem:[#allocation2 + $0xe0] sm:$0xff] %v911_v7  ;;  %v914_v12 = vadd.f32 %v1523_v11, %v913_v10 }
 0x2d5   :  { %956 = vst [vmem:[#allocation2 + $0xf8] sm:$0xff] %v922_v9 }
 0x2d6   :  { %954 = vst [vmem:[#allocation2 + $0xe8] sm:$0xff] %v914_v12 }
 0x2d7   :  { %1268 = shalt.err (!%p1265_p4)
}
 0x2d8   :  { %s1269_s23 = scalar_lea.hbm %s1576_s7, 4096 }
 0x2d9   :  { %p1270_p5 = scmp.ne.s32.totalorder %s1576_s7, %s1269_s23  ;;  %p1273_p6 = scmp.lt.u32.totalorder %s1269_s23, %s1576_s7 }
 0x2db   :  { %p1275_p7 = pnand %p1273_p6, %p1270_p5 }
 0x2dd   :  { %1278 = shalt.err (!%p1275_p7)
}
 0x2de   :  { %s1283_s27 = smov 128   ;;  %s1284_s28 = smov 8  }
 0x2df   :  { %968 = dma.vmem_to_hbm [thread:$0]  %s963_s19, 4096, %s1576_s7, [#allocation3], %s1283_s27, %s1283_s27, %s1284_s28  }
 0x2e0   :  { %1279 = dma.done.wait [#allocation3], 4096  }
 0x2e1   :  { %1280 = vsyncadd [#allocation3], 4294963200 }
 0x2e2   :  { %972 = vsyncpa [#allocation3], 1 }

</bundles_post_ra>
